<compile_context>
chip_gen: v7x
topology: tpu7x:2x2x1
jax: 0.10.0
libtpu: 0.0.40
codegen_flags: <defaults>
</compile_context>

<pallas_src>
import math

import jax
import jax.numpy as jnp
from jax.experimental import pallas as pl
from jax.experimental.pallas import tpu as pltpu


def _dense_kernel(x_ref, w_ref, b_ref, o_ref):
    """o = x @ w + b for one (row-block, col-block) tile.

    x_ref: (tm, K)        activation row block (compute dtype)
    w_ref: (K, tn) or (K,N)  weight tile, already transposed (compute dtype)
    b_ref: (1, tn) or (1,N)  bias tile (f32)
    o_ref: (tm, tn)/(tm,N)   output tile (x.dtype)
    """
    acc = jnp.dot(x_ref[...], w_ref[...], preferred_element_type=jnp.float32)
    o_ref[...] = (acc + b_ref[...]).astype(o_ref.dtype)


def _round_up(a, b):
    return ((a + b - 1) // b) * b


def dino2_attention_output(x, weight, bias, *, tm=256, tn=256,
                           compute_dtype=jnp.bfloat16):
    """y = x @ weight.T + bias (PyTorch nn.Linear forward) on TPU via Pallas.

    x:      (..., input_dim)
    weight: (output_dim, input_dim)    -- native PyTorch Linear layout
    bias:   (output_dim,)
    compute_dtype: dtype for the MXU matmul (default bf16 for inference);
                   pass None to keep x's dtype.  Accumulation / bias add are
                   always f32; the output is returned in x.dtype.
    """
    *lead, K = x.shape
    N, K_w = weight.shape
    assert K == K_w, f"weight shape {weight.shape} incompatible with x[..., {K}]"
    M = math.prod(lead) if lead else 1
    out_dtype = x.dtype

    # One-time transpose so the kernel contraction is plain NN (no per-step
    # XLU transpose of the grid-invariant weight inside the kernel).
    w_t = weight.T                                   # (K, N)
    if compute_dtype is not None:
        x = x.astype(compute_dtype)
        w_t = w_t.astype(compute_dtype)
    x2 = x.reshape(M, K)
    b2 = bias.reshape(1, N).astype(jnp.float32)      # bias added in f32

    c_size = jnp.dtype(x2.dtype).itemsize            # compute dtype bytes
    o_size = jnp.dtype(out_dtype).itemsize           # output dtype bytes

    # Row tile: multiple of 8 sublanes.  No padding -- ragged last block is
    # masked by Pallas at writeback (grid = cdiv(M, tm)).
    tm_eff = min(tm, _round_up(M, 8))
    n_row_blocks = pl.cdiv(M, tm_eff)

    # Column tiling only when there are too few row blocks to pipeline /
    # feed both v7x TensorCores, and N splits cleanly into tn-wide tiles.
    tile_n = (n_row_blocks < 4) and (N % tn == 0) and (N // tn >= 2)

    def build(single_buffer_invariants):
        if tile_n:
            tn_eff = tn
            # Column axis OUTERMOST: each (K, tn) weight tile is fetched from
            # HBM exactly once; x row blocks are re-streamed per column tile
            # (cheap, since this path only triggers for small M).
            grid = (N // tn_eff, n_row_blocks)
            in_specs = [
                pl.BlockSpec((tm_eff, K), lambda j, i: (i, 0)),
                pl.BlockSpec((K, tn_eff), lambda j, i: (0, j)),
                pl.BlockSpec((1, tn_eff), lambda j, i: (0, j)),
            ]
            out_specs = pl.BlockSpec((tm_eff, tn_eff), lambda j, i: (i, j))
            dims = ("parallel", "parallel")
            est_bytes = (2 * tm_eff * K * c_size          # x double buffer
                         + 2 * K * tn_eff * c_size        # weight tiles
                         + 2 * tn_eff * 4                 # bias tiles (f32)
                         + 2 * tm_eff * tn_eff * o_size)  # out double buffer
        else:
            # Large-M (or small-N) path: full (K, N) weight resident in VMEM,
            # 1-D grid streams row blocks of x in and y out.
            grid = (n_row_blocks,)
            if single_buffer_invariants:
                w_spec = pl.BlockSpec((K, N), lambda i: (0, 0),
                                      pipeline_mode=pl.Buffered(1))
                b_spec = pl.BlockSpec((1, N), lambda i: (0, 0),
                                      pipeline_mode=pl.Buffered(1))
                w_bufs = 1
            else:
                w_spec = pl.BlockSpec((K, N), lambda i: (0, 0))
                b_spec = pl.BlockSpec((1, N), lambda i: (0, 0))
                w_bufs = 2
            in_specs = [pl.BlockSpec((tm_eff, K), lambda i: (i, 0)),
                        w_spec, b_spec]
            out_specs = pl.BlockSpec((tm_eff, N), lambda i: (i, 0))
            dims = ("parallel",)
            est_bytes = (2 * tm_eff * K * c_size          # x double buffer
                         + w_bufs * K * N * c_size        # resident weight
                         + w_bufs * N * 4                 # bias (f32)
                         + 2 * tm_eff * N * o_size)       # out double buffer

        # Floor 32 MiB (v5e/v6e have 128 MiB physical), cap 48 MiB (leaves
        # headroom inside v7x's 64 MiB per-TC budget).
        vmem_limit = int(min(max(int(1.5 * est_bytes), 32 * 1024 * 1024),
                             48 * 1024 * 1024))

        return pl.pallas_call(
            _dense_kernel,
            out_shape=jax.ShapeDtypeStruct((M, N), out_dtype),
            grid_spec=pltpu.PrefetchScalarGridSpec(
                num_scalar_prefetch=0,
                grid=grid,
                in_specs=in_specs,
                out_specs=out_specs,
            ),
            compiler_params=pltpu.CompilerParams(
                dimension_semantics=dims,
                vmem_limit_bytes=vmem_limit,
            ),
        )

    try:
        out = build(single_buffer_invariants=True)(x2, w_t, b2)
    except Exception:
        # Fallback if this JAX build rejects pipeline_mode=pl.Buffered(1) on
        # grid-invariant inputs; semantics are identical, just 2x weight VMEM.
        out = build(single_buffer_invariants=False)(x2, w_t, b2)

    return out.reshape(*lead, N) if lead else out.reshape(N)


if __name__ == "__main__":
    # Small, deterministic synthetic configuration matching the module's
    # forward (Linear over the last dim of a (batch, seq, hidden) tensor).
    batch, seq = 2, 8
    input_dim, output_dim = 32, 32

    key = jax.random.PRNGKey(0)
    kx, kw, kb = jax.random.split(key, 3)

    x = jax.random.normal(kx, (batch, seq, input_dim), dtype=jnp.float32)
    weight = jax.random.normal(kw, (output_dim, input_dim), dtype=jnp.float32) * 0.02
    bias = jax.random.normal(kb, (output_dim,), dtype=jnp.float32) * 0.02

    y_ref = x @ weight.T + bias

    # Default inference path: bf16 MXU compute, f32 accumulate + bias add.
    y_bf16 = jax.block_until_ready(dino2_attention_output(x, weight, bias))
    assert y_bf16.shape == (batch, seq, output_dim)
    assert jnp.allclose(y_bf16, y_ref, atol=3e-2, rtol=3e-2)

    # Full-precision path: tight numerical check against the reference.
    y_f32 = jax.block_until_ready(
        dino2_attention_output(x, weight, bias, compute_dtype=None))
    assert jnp.allclose(y_f32, y_ref, atol=1e-5, rtol=1e-5)

    # Ragged-M case (M=21 not a multiple of the row tile): exercises the
    # cdiv-grid masked last block (no wrapper-side pad / slice).
    x_odd = jax.random.normal(kx, (3, 7, input_dim), dtype=jnp.float32)
    y_odd = jax.block_until_ready(
        dino2_attention_output(x_odd, weight, bias, tm=16, compute_dtype=None))
    assert jnp.allclose(y_odd, x_odd @ weight.T + bias, atol=1e-5, rtol=1e-5)

    print("KERNEL_OK")
</pallas_src>

<mosaic_0001>
module attributes {stable_mosaic.version = 11 : i64} {
  func.func @_dense_kernel(%arg0: i32, %arg1: memref<16x32xbf16, #tpu.memory_space<vmem>>, %arg2: memref<32x32xbf16, #tpu.memory_space<vmem>>, %arg3: memref<1x32xf32, #tpu.memory_space<vmem>>, %arg4: memref<16x32xf32, #tpu.memory_space<vmem>>) attributes {dimension_semantics = [#tpu.dimension_semantics<parallel>], iteration_bounds = array<i64: 1>, scalar_prefetch = 0 : i64, scratch_operands = 0 : i64, tpu.core_type = #tpu.core_type<tc>, window_params = [{transform_indices = @transform_0, window_bounds = array<i64: 16, 32>}, {pipeline_mode = #tpu.pipeline_mode<synchronous>, transform_indices = @transform_1, window_bounds = array<i64: 32, 32>}, {pipeline_mode = #tpu.pipeline_mode<synchronous>, transform_indices = @transform_2, window_bounds = array<i64: 1, 32>}, {transform_indices = @transform_3, window_bounds = array<i64: 16, 32>}]} {
    %c0 = arith.constant 0 : index
    %c0_0 = arith.constant 0 : index
    %0 = vector.load %arg1[%c0, %c0_0] : memref<16x32xbf16, #tpu.memory_space<vmem>>, vector<16x32xbf16>
    %c0_1 = arith.constant 0 : index
    %c0_2 = arith.constant 0 : index
    %1 = vector.load %arg2[%c0_1, %c0_2] : memref<32x32xbf16, #tpu.memory_space<vmem>>, vector<32x32xbf16>
    %cst = arith.constant dense<0.000000e+00> : vector<16x32xf32>
    %2 = tpu.matmul %0, %1, %cst {dimension_numbers = #tpu.dot_dimension_numbers<[1], [0], [0], [1], [0, 0, 1, 1], [], []>} : vector<16x32xbf16>, vector<32x32xbf16>, vector<16x32xf32> -> vector<16x32xf32>
    %c0_3 = arith.constant 0 : index
    %c0_4 = arith.constant 0 : index
    %3 = vector.load %arg3[%c0_3, %c0_4] : memref<1x32xf32, #tpu.memory_space<vmem>>, vector<1x32xf32>
    %4 = vector.broadcast %3 : vector<1x32xf32> to vector<16x32xf32>
    %5 = arith.addf %2, %4 : vector<16x32xf32>
    %c0_5 = arith.constant 0 : index
    %c0_6 = arith.constant 0 : index
    %6 = vector.load %arg4[%c0_5, %c0_6] : memref<16x32xf32, #tpu.memory_space<vmem>>, vector<16x32xf32>
    tpu.vector_store %arg4[%c0_5, %c0_6], %5 {strides = array<i32>} : memref<16x32xf32, #tpu.memory_space<vmem>>, vector<16x32xf32>,
    return
  }
  func.func @transform_0(%arg0: i32) -> (i32, i32) {
    %c0_i32 = arith.constant 0 : i32
    %c0_i32_0 = arith.constant 0 : i32
    return %arg0, %c0_i32 : i32, i32
  }
  func.func @transform_1(%arg0: i32) -> (i32, i32) {
    %c0_i32 = arith.constant 0 : i32
    %c0_i32_0 = arith.constant 0 : i32
    %c0_i32_1 = arith.constant 0 : i32
    return %c0_i32, %c0_i32_0 : i32, i32
  }
  func.func @transform_2(%arg0: i32) -> (i32, i32) {
    %c0_i32 = arith.constant 0 : i32
    %c0_i32_0 = arith.constant 0 : i32
    %c0_i32_1 = arith.constant 0 : i32
    return %c0_i32, %c0_i32_0 : i32, i32
  }
  func.func @transform_3(%arg0: i32) -> (i32, i32) {
    %c0_i32 = arith.constant 0 : i32
    %c0_i32_0 = arith.constant 0 : i32
    return %arg0, %c0_i32 : i32, i32
  }
}

module attributes {stable_mosaic.version = 11 : i64} {
  func.func @_dense_kernel(%arg0: i32, %arg1: memref<16x32xbf16, #tpu.memory_space<vmem>>, %arg2: memref<32x32xbf16, #tpu.memory_space<vmem>>, %arg3: memref<1x32xf32, #tpu.memory_space<vmem>>, %arg4: memref<16x32xf32, #tpu.memory_space<vmem>>) attributes {dimension_semantics = [#tpu.dimension_semantics<parallel>], iteration_bounds = array<i64: 1>, scalar_prefetch = 0 : i64, scratch_operands = 0 : i64, tpu.core_type = #tpu.core_type<tc>, window_params = [{transform_indices = @transform_0, window_bounds = array<i64: 16, 32>}, {pipeline_mode = #tpu.pipeline_mode<synchronous>, transform_indices = @transform_1, window_bounds = array<i64: 32, 32>}, {pipeline_mode = #tpu.pipeline_mode<synchronous>, transform_indices = @transform_2, window_bounds = array<i64: 1, 32>}, {transform_indices = @transform_3, window_bounds = array<i64: 16, 32>}]} {
    %c0 = arith.constant 0 : index
    %c0_0 = arith.constant 0 : index
    %0 = vector.load %arg1[%c0, %c0_0] : memref<16x32xbf16, #tpu.memory_space<vmem>>, vector<16x32xbf16>
    %c0_1 = arith.constant 0 : index
    %c0_2 = arith.constant 0 : index
    %1 = vector.load %arg2[%c0_1, %c0_2] : memref<32x32xbf16, #tpu.memory_space<vmem>>, vector<32x32xbf16>
    %cst = arith.constant dense<0.000000e+00> : vector<16x32xf32>
    %2 = tpu.matmul %0, %1, %cst {dimension_numbers = #tpu.dot_dimension_numbers<[1], [0], [0], [1], [0, 0, 1, 1], [], []>} : vector<16x32xbf16>, vector<32x32xbf16>, vector<16x32xf32> -> vector<16x32xf32>
    %c0_3 = arith.constant 0 : index
    %c0_4 = arith.constant 0 : index
    %3 = vector.load %arg3[%c0_3, %c0_4] : memref<1x32xf32, #tpu.memory_space<vmem>>, vector<1x32xf32>
    %4 = vector.broadcast %3 : vector<1x32xf32> to vector<16x32xf32>
    %5 = arith.addf %2, %4 : vector<16x32xf32>
    %c0_5 = arith.constant 0 : index
    %c0_6 = arith.constant 0 : index
    %6 = vector.load %arg4[%c0_5, %c0_6] : memref<16x32xf32, #tpu.memory_space<vmem>>, vector<16x32xf32>
    tpu.vector_store %arg4[%c0_5, %c0_6], %5 {strides = array<i32>} : memref<16x32xf32, #tpu.memory_space<vmem>>, vector<16x32xf32>,
    return
  }
  func.func @transform_0(%arg0: i32) -> (i32, i32) {
    %c0_i32 = arith.constant 0 : i32
    %c0_i32_0 = arith.constant 0 : i32
    return %arg0, %c0_i32 : i32, i32
  }
  func.func @transform_1(%arg0: i32) -> (i32, i32) {
    %c0_i32 = arith.constant 0 : i32
    %c0_i32_0 = arith.constant 0 : i32
    %c0_i32_1 = arith.constant 0 : i32
    return %c0_i32, %c0_i32_0 : i32, i32
  }
  func.func @transform_2(%arg0: i32) -> (i32, i32) {
    %c0_i32 = arith.constant 0 : i32
    %c0_i32_0 = arith.constant 0 : i32
    %c0_i32_1 = arith.constant 0 : i32
    return %c0_i32, %c0_i32_0 : i32, i32
  }
  func.func @transform_3(%arg0: i32) -> (i32, i32) {
    %c0_i32 = arith.constant 0 : i32
    %c0_i32_0 = arith.constant 0 : i32
    return %arg0, %c0_i32 : i32, i32
  }
}

</mosaic_0001>

<bundles_post_ra>
// kernel: tpu_custom_call.1
= control target key start
LH: loop header
LB: loop body
LE: loop exit
PB: predicated region body
PF: predicated region fallthrough
CT: control target
= control target key end

     0   :  { %8 = vsyncpa [#allocation3], 0  ;;  %s307_s0 = inlined_call_operand.hbm [shape: bf16[16,32], index: 0, kind: input, shape index: {}]   ;;  %s308_s1 = inlined_call_operand.hbm [shape: bf16[32,32], index: 1, kind: input, shape index: {}]   ;;  %s309_s2 = inlined_call_operand.vmem [shape: f32[1,32], index: 2, kind: input, shape index: {}]   ;;  %s310_s3 = inlined_call_operand.hbm [shape: f32[16,32], index: 3, kind: output, shape index: {}]  }
   0x1   :  { %9 = vsyncpa [#allocation6], 0 }
   0x2   :  { %10 = vsyncpa [#allocation4], 0  ;;  %s239_s12 = smov [#allocation2]   ;;  %s167_s16 = scalar_lea.hbm %s307_s0, 128 }
   0x3   :  { %s16_s13 = sshll.u32 %s239_s12, 4  ;;  %p168_p0 = scmp.ne.s32.totalorder %s307_s0, %s167_s16  ;;  %s17_s13 = int_to_ptr.vmem [resolvable:$true] %s16_s13 }
   0x4   :  { %p171_p1 = scmp.lt.u32.totalorder %s167_s16, %s307_s0 }
   0x6   :  { %p173_p2 = pnand %p171_p1, %p168_p0 }
   0x8   :  { %176 = shalt.err (!%p173_p2)
}
   0x9   :  { %s177_s21 = scalar_lea.vmem %s17_s13, 128  ;;  %p182_p4 = scmp.lt.s32.totalorder %s17_s13, %s17_s13 }
   0xa   :  { %p178_p3 = scmp.ne.s32.totalorder %s17_s13, %s177_s21  ;;  %p183_p5 = scmp.lt.s32.totalorder %s177_s21, %s177_s21 }
   0xc   :  { %p184_p6 = por %p183_p5, %p182_p4 }
   0xe   :  { %p185_p7 = pnand %p184_p6, %p178_p3 }
  0x10   :  { %188 = shalt.err (!%p185_p7)
}
  0x11   :  { %s240_s22 = smov 64   ;;  %s241_s23 = smov 4  }
  0x12   :  { %22 = dma.hbm_to_vmem [thread:$0]  %s307_s0, 128, %s17_s13, [#allocation3], %s240_s22, %s240_s22, %s241_s23  }
  0x13   :  { %s242_s26 = smov [#allocation5]   ;;  %s189_s30 = scalar_lea.hbm %s308_s1, 256 }
  0x14   :  { %s28_s27 = sshll.u32 %s242_s26, 4  ;;  %p190_p8 = scmp.ne.s32.totalorder %s308_s1, %s189_s30  ;;  %s29_s27 = int_to_ptr.vmem [resolvable:$true] %s28_s27 }
  0x15   :  { %p193_p9 = scmp.lt.u32.totalorder %s189_s30, %s308_s1 }
  0x17   :  { %p195_p10 = pnand %p193_p9, %p190_p8 }
  0x19   :  { %198 = shalt.err (!%p195_p10)
}
  0x1a   :  { %s199_s8 = scalar_lea.vmem %s29_s27, 256  ;;  %p204_p12 = scmp.lt.s32.totalorder %s29_s27, %s29_s27 }
  0x1b   :  { %p200_p11 = scmp.ne.s32.totalorder %s29_s27, %s199_s8  ;;  %p205_p13 = scmp.lt.s32.totalorder %s199_s8, %s199_s8 }
  0x1d   :  { %p206_p0 = por %p205_p13, %p204_p12 }
  0x1f   :  { %p207_p1 = pnand %p206_p0, %p200_p11 }
  0x21   :  { %210 = shalt.err (!%p207_p1)
}
  0x22   :  { %34 = dma.hbm_to_vmem [thread:$0]  %s308_s1, 256, %s29_s27, [#allocation6], %s240_s22, %s240_s22, %s241_s23  }
  0x23   :  { %233 = dma.done.wait [#allocation3], 128  }
  0x24   :  { %234 = vsyncadd [#allocation3], 4294967168 }
  0x25   :  { %235 = dma.done.wait [#allocation6], 256  }
  0x26   :  { %236 = vsyncadd [#allocation6], 4294967040  ;;  %v243_v0 = vmov 0.0   ;;  %vm244_vm0 = vmmov 0   ;;  %v164_v1 = vld [vmem:[#allocation5] sm:$0xff]   ;;  %v165_v2 = vld [vmem:[#allocation5 + $0x8] sm:$0xff]  }
  0x27   :  { %147 = vmatprep.subr.bf16.mxu0 %v243_v0  ;;  %151 = vmatprep.mubr.msk.bf16.mxu0 %vm244_vm0, %v243_v0  ;;  %v166_v3 = vld [vmem:[#allocation2] sm:$0xff]   ;;  %vm74_vm1 = vcmask 261120   ;;  %s245_s1 = smov [#allocation7]  }
  0x28   :  { %148 = vmatpush3.bf16.msra.mxu0 %v164_v1  ;;  %v139_v4 = vld [vmem:[%s309_s2] ss:$0 sm:$0xff]  ;;  %s126_s12 = sshll.u32 %s245_s1, 4  ;;  %s127_s12 = int_to_ptr.vmem [resolvable:$true] %s126_s12 }
  0x29   :  { %149 = vmatprep.subr.bf16.mxu0 %v243_v0  ;;  %s211_s13 = scalar_lea.vmem %s127_s12, 256  ;;  %p216_p3 = scmp.lt.s32.totalorder %s127_s12, %s127_s12 }
  0x2a   :  { %p212_p2 = scmp.ne.s32.totalorder %s127_s12, %s211_s13  ;;  %p217_p4 = scmp.lt.s32.totalorder %s211_s13, %s211_s13 }
  0x2c   :  { %150 = vmatpush3.bf16.msra.mxu0 %v165_v2  ;;  %p218_p5 = por %p217_p4, %p216_p3 }
  0x2e   :  { %p219_p6 = pnand %p218_p5, %p212_p2 }
  0x2f   :  { %152 = vmatmul.mubr.msk.bf16.vlgmr.msra.gmra.mrb[0].mxu0 %vm74_vm1, %v166_v3 }
 0x102   :  { %v112_v5 = vpop.f32.mrb[0].mxu0 }
 0x103   :  { %v113_v6 = vadd.f32 %v139_v4, %v112_v5  ;;  %v153_v7 = vpop.f32.mrb[1].mxu0 }
 0x104   :  { %v115_v8 = vpop.f32.mrb[2].mxu0 }
 0x105   :  { %119 = vst.msk [vmem:[#allocation7] sm:$0xff] %vm74_vm1, %v113_v6  ;;  %v116_v9 = vadd.f32 %v139_v4, %v115_v8  ;;  %v154_v10 = vpop.f32.mrb[3].mxu0 }
 0x107   :  { %120 = vst.msk [vmem:[#allocation7 + $0x8] sm:$0xff] %vm74_vm1, %v116_v9 }
 0x108   :  { %222 = shalt.err (!%p219_p6)
}
 0x109   :  { %s223_s15 = scalar_lea.hbm %s310_s3, 256 }
 0x10a   :  { %p224_p7 = scmp.ne.s32.totalorder %s310_s3, %s223_s15  ;;  %p227_p8 = scmp.lt.u32.totalorder %s223_s15, %s310_s3 }
 0x10c   :  { %p229_p9 = pnand %p227_p8, %p224_p7 }
 0x10e   :  { %232 = shalt.err (!%p229_p9)
}
 0x10f   :  { %s246_s20 = smov 128   ;;  %s247_s21 = smov 8  }
 0x110   :  { %132 = dma.vmem_to_hbm [thread:$0]  %s127_s12, 256, %s310_s3, [#allocation4], %s246_s20, %s246_s20, %s247_s21  }
 0x111   :  { %237 = dma.done.wait [#allocation4], 256  }
 0x112   :  { %238 = vsyncadd [#allocation4], 4294967040 }
 0x113   :  { %136 = vsyncpa [#allocation3], 1 }
 0x114   :  { %137 = vsyncpa [#allocation6], 1 }
 0x115   :  { %138 = vsyncpa [#allocation4], 1 }

// kernel: tpu_custom_call.1
= control target key start
LH: loop header
LB: loop body
LE: loop exit
PB: predicated region body
PF: predicated region fallthrough
CT: control target
= control target key end

     0   :  { %8 = vsyncpa [#allocation3], 0  ;;  %s307_s0 = inlined_call_operand.hbm [shape: bf16[16,32], index: 0, kind: input, shape index: {}]   ;;  %s308_s1 = inlined_call_operand.hbm [shape: bf16[32,32], index: 1, kind: input, shape index: {}]   ;;  %s309_s2 = inlined_call_operand.vmem [shape: f32[1,32], index: 2, kind: input, shape index: {}]   ;;  %s310_s3 = inlined_call_operand.hbm [shape: f32[16,32], index: 3, kind: output, shape index: {}]  }
   0x1   :  { %9 = vsyncpa [#allocation6], 0 }
   0x2   :  { %10 = vsyncpa [#allocation4], 0  ;;  %s239_s12 = smov [#allocation2]   ;;  %s167_s16 = scalar_lea.hbm %s307_s0, 128 }
   0x3   :  { %s16_s13 = sshll.u32 %s239_s12, 4  ;;  %p168_p0 = scmp.ne.s32.totalorder %s307_s0, %s167_s16  ;;  %s17_s13 = int_to_ptr.vmem [resolvable:$true] %s16_s13 }
   0x4   :  { %p171_p1 = scmp.lt.u32.totalorder %s167_s16, %s307_s0 }
   0x6   :  { %p173_p2 = pnand %p171_p1, %p168_p0 }
   0x8   :  { %176 = shalt.err (!%p173_p2)
}
   0x9   :  { %s177_s21 = scalar_lea.vmem %s17_s13, 128  ;;  %p182_p4 = scmp.lt.s32.totalorder %s17_s13, %s17_s13 }
   0xa   :  { %p178_p3 = scmp.ne.s32.totalorder %s17_s13, %s177_s21  ;;  %p183_p5 = scmp.lt.s32.totalorder %s177_s21, %s177_s21 }
   0xc   :  { %p184_p6 = por %p183_p5, %p182_p4 }
   0xe   :  { %p185_p7 = pnand %p184_p6, %p178_p3 }
  0x10   :  { %188 = shalt.err (!%p185_p7)
}
  0x11   :  { %s240_s22 = smov 64   ;;  %s241_s23 = smov 4  }
  0x12   :  { %22 = dma.hbm_to_vmem [thread:$0]  %s307_s0, 128, %s17_s13, [#allocation3], %s240_s22, %s240_s22, %s241_s23  }
  0x13   :  { %s242_s26 = smov [#allocation5]   ;;  %s189_s30 = scalar_lea.hbm %s308_s1, 256 }
  0x14   :  { %s28_s27 = sshll.u32 %s242_s26, 4  ;;  %p190_p8 = scmp.ne.s32.totalorder %s308_s1, %s189_s30  ;;  %s29_s27 = int_to_ptr.vmem [resolvable:$true] %s28_s27 }
  0x15   :  { %p193_p9 = scmp.lt.u32.totalorder %s189_s30, %s308_s1 }
  0x17   :  { %p195_p10 = pnand %p193_p9, %p190_p8 }
  0x19   :  { %198 = shalt.err (!%p195_p10)
}
  0x1a   :  { %s199_s8 = scalar_lea.vmem %s29_s27, 256  ;;  %p204_p12 = scmp.lt.s32.totalorder %s29_s27, %s29_s27 }
  0x1b   :  { %p200_p11 = scmp.ne.s32.totalorder %s29_s27, %s199_s8  ;;  %p205_p13 = scmp.lt.s32.totalorder %s199_s8, %s199_s8 }
  0x1d   :  { %p206_p0 = por %p205_p13, %p204_p12 }
  0x1f   :  { %p207_p1 = pnand %p206_p0, %p200_p11 }
  0x21   :  { %210 = shalt.err (!%p207_p1)
}
  0x22   :  { %34 = dma.hbm_to_vmem [thread:$0]  %s308_s1, 256, %s29_s27, [#allocation6], %s240_s22, %s240_s22, %s241_s23  }
  0x23   :  { %233 = dma.done.wait [#allocation3], 128  }
  0x24   :  { %234 = vsyncadd [#allocation3], 4294967168 }
  0x25   :  { %235 = dma.done.wait [#allocation6], 256  }
  0x26   :  { %236 = vsyncadd [#allocation6], 4294967040  ;;  %v243_v0 = vmov 0.0   ;;  %vm244_vm0 = vmmov 0   ;;  %v164_v1 = vld [vmem:[#allocation5] sm:$0xff]   ;;  %v165_v2 = vld [vmem:[#allocation5 + $0x8] sm:$0xff]  }
  0x27   :  { %147 = vmatprep.subr.bf16.mxu0 %v243_v0  ;;  %151 = vmatprep.mubr.msk.bf16.mxu0 %vm244_vm0, %v243_v0  ;;  %v166_v3 = vld [vmem:[#allocation2] sm:$0xff]   ;;  %vm74_vm1 = vcmask 261120   ;;  %s245_s1 = smov [#allocation7]  }
  0x28   :  { %148 = vmatpush3.bf16.msra.mxu0 %v164_v1  ;;  %v139_v4 = vld [vmem:[%s309_s2] ss:$0 sm:$0xff]  ;;  %s126_s12 = sshll.u32 %s245_s1, 4  ;;  %s127_s12 = int_to_ptr.vmem [resolvable:$true] %s126_s12 }
  0x29   :  { %149 = vmatprep.subr.bf16.mxu0 %v243_v0  ;;  %s211_s13 = scalar_lea.vmem %s127_s12, 256  ;;  %p216_p3 = scmp.lt.s32.totalorder %s127_s12, %s127_s12 }
  0x2a   :  { %p212_p2 = scmp.ne.s32.totalorder %s127_s12, %s211_s13  ;;  %p217_p4 = scmp.lt.s32.totalorder %s211_s13, %s211_s13 }
  0x2c   :  { %150 = vmatpush3.bf16.msra.mxu0 %v165_v2  ;;  %p218_p5 = por %p217_p4, %p216_p3 }
  0x2e   :  { %p219_p6 = pnand %p218_p5, %p212_p2 }
  0x2f   :  { %152 = vmatmul.mubr.msk.bf16.vlgmr.msra.gmra.mrb[0].mxu0 %vm74_vm1, %v166_v3 }
 0x102   :  { %v112_v5 = vpop.f32.mrb[0].mxu0 }
 0x103   :  { %v113_v6 = vadd.f32 %v139_v4, %v112_v5  ;;  %v153_v7 = vpop.f32.mrb[1].mxu0 }
 0x104   :  { %v115_v8 = vpop.f32.mrb[2].mxu0 }
 0x105   :  { %119 = vst.msk [vmem:[#allocation7] sm:$0xff] %vm74_vm1, %v113_v6  ;;  %v116_v9 = vadd.f32 %v139_v4, %v115_v8  ;;  %v154_v10 = vpop.f32.mrb[3].mxu0 }
 0x107   :  { %120 = vst.msk [vmem:[#allocation7 + $0x8] sm:$0xff] %vm74_vm1, %v116_v9 }
 0x108   :  { %222 = shalt.err (!%p219_p6)
}
 0x109   :  { %s223_s15 = scalar_lea.hbm %s310_s3, 256 }
 0x10a   :  { %p224_p7 = scmp.ne.s32.totalorder %s310_s3, %s223_s15  ;;  %p227_p8 = scmp.lt.u32.totalorder %s223_s15, %s310_s3 }
 0x10c   :  { %p229_p9 = pnand %p227_p8, %p224_p7 }
 0x10e   :  { %232 = shalt.err (!%p229_p9)
}
 0x10f   :  { %s246_s20 = smov 128   ;;  %s247_s21 = smov 8  }
 0x110   :  { %132 = dma.vmem_to_hbm [thread:$0]  %s127_s12, 256, %s310_s3, [#allocation4], %s246_s20, %s246_s20, %s247_s21  }
 0x111   :  { %237 = dma.done.wait [#allocation4], 256  }
 0x112   :  { %238 = vsyncadd [#allocation4], 4294967040 }
 0x113   :  { %136 = vsyncpa [#allocation3], 1 }
 0x114   :  { %137 = vsyncpa [#allocation6], 1 }
 0x115   :  { %138 = vsyncpa [#allocation4], 1 }

</bundles_post_ra>
